<compile_context>
chip_gen: v7x
topology: tpu7x:2x2x1
jax: 0.10.0
libtpu: 0.0.40
codegen_flags: <defaults>
</compile_context>

<pallas_src>
import functools

import jax
import jax.numpy as jnp
from jax.experimental import pallas as pl
from jax.experimental.pallas import tpu as pltpu


def _round_up(x, m):
    return ((x + m - 1) // m) * m


def _pick_col_block(d, cap=512):
    """Largest multiple of 128 that divides `d` (capped); else the full d."""
    if d % 128 != 0:
        return d
    best = 128
    cand = 256
    while cand <= min(d, cap):
        if d % cand == 0:
            best = cand
        cand += 128
    return best


# ---------------------------------------------------------------------------
# Kernel 1: streamed column mean of an embedding table  [V, D] -> [1, D] f32
# ---------------------------------------------------------------------------

def _col_mean_kernel(x_ref, out_ref, *, inv_rows):
    i = pl.program_id(1)          # row-tile index (reduction axis, innermost)

    @pl.when(i == 0)
    def _init():
        out_ref[...] = jnp.zeros_like(out_ref)

    # Upcast to f32 before accumulating (bf16 tables keep full accuracy).
    out_ref[...] += jnp.sum(x_ref[...].astype(jnp.float32), axis=0,
                            keepdims=True)

    @pl.when(i == pl.num_programs(1) - 1)
    def _finalize():
        out_ref[...] = out_ref[...] * jnp.float32(inv_rows)


def column_mean(x, *, tile_rows=1024):
    """Mean over dim 0 of a [V, D] array, streamed in (tile_v, block_d) tiles."""
    v, d = x.shape
    tile_v = min(_round_up(v, 8), _round_up(tile_rows, 8))
    v_pad = _round_up(v, tile_v)
    if v_pad != v:                       # zero rows do not change the sum
        x = jnp.pad(x, ((0, v_pad - v), (0, 0)))
    block_d = _pick_col_block(d)
    grid = (d // block_d, v_pad // tile_v)   # (parallel cols, arbitrary rows)
    return pl.pallas_call(
        functools.partial(_col_mean_kernel, inv_rows=1.0 / v),
        out_shape=jax.ShapeDtypeStruct((1, d), jnp.float32),
        grid=grid,
        in_specs=[pl.BlockSpec((tile_v, block_d), lambda j, i: (i, j))],
        out_specs=pl.BlockSpec((1, block_d), lambda j, i: (0, j)),
        compiler_params=pltpu.CompilerParams(
            dimension_semantics=("parallel", "arbitrary")),
    )(x)


# ---------------------------------------------------------------------------
# Kernel 2: streamed cross-covariance loss (batch tiled over N)
# ---------------------------------------------------------------------------

def _cross_cov_loss_kernel(a_ref, b_ref, m1_ref, m2_ref, out_ref,
                           acc_ref, s1_ref, s2_ref, *, n_rows, d1, d2):
    i = pl.program_id(0)

    @pl.when(i == 0)
    def _init():
        acc_ref[...] = jnp.zeros_like(acc_ref)
        s1_ref[...] = jnp.zeros_like(s1_ref)
        s2_ref[...] = jnp.zeros_like(s2_ref)

    a = a_ref[...]                      # (tile_n, D1), native dtype
    b = b_ref[...]                      # (tile_n, D2), native dtype

    # Partial A^T B on the MXU with an f32 accumulator.
    acc_ref[...] += jax.lax.dot_general(
        a, b, dimension_numbers=(((0,), (0,)), ((), ())),
        preferred_element_type=jnp.float32)

    # Batch column sums, accumulated in f32.
    s1_ref[...] += jnp.sum(a.astype(jnp.float32), axis=0, keepdims=True)
    s2_ref[...] += jnp.sum(b.astype(jnp.float32), axis=0, keepdims=True)

    @pl.when(i == pl.num_programs(0) - 1)
    def _finalize():
        n = jnp.float32(n_rows)
        m1 = m1_ref[...]                # (1, D1) table-1 column mean, f32
        m2 = m2_ref[...]                # (1, D2) table-2 column mean, f32
        s1 = s1_ref[...]
        s2 = s2_ref[...]

        def outer(u, w):                # (1, P) x (1, Q) -> (P, Q)
            return jax.lax.dot_general(
                u, w, dimension_numbers=(((0,), (0,)), ((), ())),
                preferred_element_type=jnp.float32)

        # (A - 1 m1)^T (B - 1 m2) = A^T B - s1^T (x) m2 - m1^T (x) (s2 - N m2)
        # NOTE: division by (N - 1) mirrors the PyTorch module (N == 1 -> inf).
        cc = (acc_ref[...] - outer(s1, m2) - outer(m1, s2 - n * m2)) / (
            n - jnp.float32(1.0))
        out_ref[0, 0] = jnp.sum(cc * cc) * jnp.float32(1.0 / (d1 * d2))


def cross_cov_loss(batch1, batch2, mean1, mean2, *, tile_rows=256):
    n, d1 = batch1.shape
    n2, d2 = batch2.shape
    assert n == n2, "batch_attr1/batch_attr2 must share the batch dim"
    tile_n = min(_round_up(n, 8), _round_up(tile_rows, 8))
    n_pad = _round_up(n, tile_n)
    if n_pad != n:                       # zero rows contribute nothing
        batch1 = jnp.pad(batch1, ((0, n_pad - n), (0, 0)))
        batch2 = jnp.pad(batch2, ((0, n_pad - n), (0, 0)))
    grid = (n_pad // tile_n,)
    # TODO(synk): for very large D2, add a "parallel" output-column grid axis
    #   so v7x's second TensorCore also shares this kernel.
    out = pl.pallas_call(
        functools.partial(_cross_cov_loss_kernel, n_rows=n, d1=d1, d2=d2),
        out_shape=jax.ShapeDtypeStruct((1, 1), jnp.float32),
        grid=grid,
        in_specs=[
            pl.BlockSpec((tile_n, d1), lambda i: (i, 0)),
            pl.BlockSpec((tile_n, d2), lambda i: (i, 0)),
            pl.BlockSpec((1, d1), lambda i: (0, 0)),
            pl.BlockSpec((1, d2), lambda i: (0, 0)),
        ],
        out_specs=pl.BlockSpec((1, 1), lambda i: (0, 0)),
        scratch_shapes=[
            pltpu.VMEM((d1, d2), jnp.float32),   # A^T B accumulator
            pltpu.VMEM((1, d1), jnp.float32),    # colsum(A)
            pltpu.VMEM((1, d2), jnp.float32),    # colsum(B)
        ],
        compiler_params=pltpu.CompilerParams(
            dimension_semantics=("arbitrary",)),
    )(batch1, batch2, mean1, mean2)
    return out[0, 0]


class AttributeMinCrossCovarianceRegLoss:
    """JAX/Pallas port of the PyTorch module (forward pass only)."""

    def __init__(self, attr_name1, attr_name2, loss_cross_covariance_weight,
                 gamma=1):
        self.attr_name1 = attr_name1
        self.attr_name2 = attr_name2
        self.loss_cross_covariance_weight = float(loss_cross_covariance_weight)
        # `gamma` is accepted but unused, mirroring the PyTorch module.

    def __call__(self, batch_attr1, batch_attr2,
                 attr1_embeddings=None, attr2_embeddings=None,
                 *, table_tile_rows=1024, batch_tile_rows=256):
        # `attr*_embeddings` are the nn.Embedding.weight arrays (or None, in
        # which case the minibatch itself provides the mean).
        emb1_w = attr1_embeddings if attr1_embeddings is not None else batch_attr1
        emb2_w = attr2_embeddings if attr2_embeddings is not None else batch_attr2

        # No wrapper-side f32 up-cast: tables/batch stay in their native dtype
        # (e.g. bf16) and are only up-cast / accumulated in f32 in-kernel.
        mean1 = column_mean(emb1_w, tile_rows=table_tile_rows)
        mean2 = column_mean(emb2_w, tile_rows=table_tile_rows)
        loss = cross_cov_loss(batch_attr1, batch_attr2, mean1, mean2,
                              tile_rows=batch_tile_rows)
        key = "loss_{}-{}_cross_covariance".format(self.attr_name1,
                                                   self.attr_name2)
        return {key: (loss, self.loss_cross_covariance_weight)}


# ---------------------------------------------------------------------------
# Pure-JAX reference (mirrors the PyTorch forward) and self-test.
# ---------------------------------------------------------------------------

def _reference_loss(batch_attr1, batch_attr2, emb1_w, emb2_w):
    b1 = batch_attr1.astype(jnp.float32)
    b2 = batch_attr2.astype(jnp.float32)
    e1 = emb1_w.astype(jnp.float32)
    e2 = emb2_w.astype(jnp.float32)
    n = b1.shape[0]
    d1, d2 = e1.shape[1], e2.shape[1]
    a = b1 - e1.mean(axis=0, keepdims=True)
    b = b2 - e2.mean(axis=0, keepdims=True)
    cc = (a.T @ b) / (n - 1)
    return jnp.sum(cc ** 2) / (d1 * d2)


if __name__ == "__main__":
    key = jax.random.PRNGKey(0)
    k1, k2, k3, k4 = jax.random.split(key, 4)

    N, D1, D2 = 8, 32, 32           # minibatch size, attribute dims
    V1, V2 = 16, 16                 # embedding-table sizes

    batch_attr1 = jax.random.normal(k1, (N, D1), dtype=jnp.float32)
    batch_attr2 = jax.random.normal(k2, (N, D2), dtype=jnp.float32)
    emb1_weight = jax.random.normal(k3, (V1, D1), dtype=jnp.float32)
    emb2_weight = jax.random.normal(k4, (V2, D2), dtype=jnp.float32)

    module = AttributeMinCrossCovarianceRegLoss(
        "age", "gender", loss_cross_covariance_weight=0.5)

    # Tolerances absorb possible MXU bf16-pass rounding differences between
    # the streamed decomposition and the monolithic reference matmul; any
    # real bug (wrong divisor / dropped correction term) is a >4% error.

    # 1) f32 path with embedding tables.
    (loss, weight), = module(batch_attr1, batch_attr2,
                             emb1_weight, emb2_weight).values()
    loss = jax.block_until_ready(loss)
    ref = _reference_loss(batch_attr1, batch_attr2, emb1_weight, emb2_weight)
    assert jnp.allclose(loss, ref, rtol=1e-2, atol=1e-7), (loss, ref)
    assert weight == 0.5

    # 2) "embeddings is None" branch (mean over the minibatch itself).
    (loss2, _), = module(batch_attr1, batch_attr2, None, None).values()
    loss2 = jax.block_until_ready(loss2)
    ref2 = _reference_loss(batch_attr1, batch_attr2, batch_attr1, batch_attr2)
    assert jnp.allclose(loss2, ref2, rtol=1e-2, atol=1e-7), (loss2, ref2)

    # 3) Native bf16 path: no wrapper up-cast, f32 accumulation in-kernel.
    b1h = batch_attr1.astype(jnp.bfloat16)
    b2h = batch_attr2.astype(jnp.bfloat16)
    e1h = emb1_weight.astype(jnp.bfloat16)
    e2h = emb2_weight.astype(jnp.bfloat16)
    (loss3, _), = module(b1h, b2h, e1h, e2h).values()
    loss3 = jax.block_until_ready(loss3)
    ref3 = _reference_loss(b1h, b2h, e1h, e2h)
    assert jnp.allclose(loss3, ref3, rtol=2e-2, atol=1e-6), (loss3, ref3)

    # 4) Multi-tile grids + zero-padding paths (odd sizes, tiny tiles).
    N2, V1b, V2b = 20, 40, 26
    kb1, kb2, ke1, ke2 = jax.random.split(jax.random.PRNGKey(1), 4)
    b1 = jax.random.normal(kb1, (N2, D1), dtype=jnp.float32)
    b2 = jax.random.normal(kb2, (N2, D2), dtype=jnp.float32)
    e1 = jax.random.normal(ke1, (V1b, D1), dtype=jnp.float32)
    e2 = jax.random.normal(ke2, (V2b, D2), dtype=jnp.float32)
    m1 = column_mean(e1, tile_rows=16)          # 40 rows -> padded 48, 3 tiles
    m2 = column_mean(e2, tile_rows=16)          # 26 rows -> padded 32, 2 tiles
    loss4 = cross_cov_loss(b1, b2, m1, m2, tile_rows=8)   # 20 -> 24, 3 tiles
    loss4 = jax.block_until_ready(loss4)
    ref4 = _reference_loss(b1, b2, e1, e2)
    assert jnp.allclose(loss4, ref4, rtol=1e-2, atol=1e-7), (loss4, ref4)

    print("KERNEL_OK")
</pallas_src>

<mosaic_0001>
module attributes {stable_mosaic.version = 11 : i64} {
  func.func @_col_mean_kernel(%arg0: i32, %arg1: i32, %arg2: memref<16x32xf32, #tpu.memory_space<vmem>>, %arg3: memref<1x32xf32, #tpu.memory_space<vmem>>) attributes {dimension_semantics = [#tpu.dimension_semantics<parallel>, #tpu.dimension_semantics<arbitrary>], iteration_bounds = array<i64: 1, 1>, scalar_prefetch = 0 : i64, scratch_operands = 0 : i64, tpu.core_type = #tpu.core_type<tc>, window_params = [{transform_indices = @transform_0, window_bounds = array<i64: 16, 32>}, {transform_indices = @transform_1, window_bounds = array<i64: 1, 32>}]} {
    %c0_i32 = arith.constant 0 : i32
    %0 = arith.cmpi eq, %arg1, %c0_i32 : i32
    %1 = arith.extui %0 : i1 to i32
    %c0_i32_0 = arith.constant 0 : i32
    %2 = arith.cmpi ne, %1, %c0_i32_0 : i32
    scf.if %2 {
      %cst_8 = arith.constant 0.000000e+00 : f32
      %12 = vector.broadcast %cst_8 : f32 to vector<1x32xf32>
      %c0_9 = arith.constant 0 : index
      %c0_10 = arith.constant 0 : index
      %13 = vector.load %arg3[%c0_9, %c0_10] : memref<1x32xf32, #tpu.memory_space<vmem>>, vector<1x32xf32>
      tpu.vector_store %arg3[%c0_9, %c0_10], %12 {strides = array<i32>} : memref<1x32xf32, #tpu.memory_space<vmem>>, vector<1x32xf32>,
    } else {
    }
    %c0 = arith.constant 0 : index
    %c0_1 = arith.constant 0 : index
    %3 = vector.load %arg3[%c0, %c0_1] : memref<1x32xf32, #tpu.memory_space<vmem>>, vector<1x32xf32>
    %c0_2 = arith.constant 0 : index
    %c0_3 = arith.constant 0 : index
    %4 = vector.load %arg2[%c0_2, %c0_3] : memref<16x32xf32, #tpu.memory_space<vmem>>, vector<16x32xf32>
    %cst = arith.constant dense<0.000000e+00> : vector<32xf32>
    %5 = vector.multi_reduction <add>, %4, %cst [0] : vector<16x32xf32> to vector<32xf32>
    %6 = vector.shape_cast %5 : vector<32xf32> to vector<1x32xf32>
    %7 = arith.addf %3, %6 : vector<1x32xf32>
    %c0_4 = arith.constant 0 : index
    %c0_5 = arith.constant 0 : index
    %8 = vector.load %arg3[%c0_4, %c0_5] : memref<1x32xf32, #tpu.memory_space<vmem>>, vector<1x32xf32>
    tpu.vector_store %arg3[%c0_4, %c0_5], %7 {strides = array<i32>} : memref<1x32xf32, #tpu.memory_space<vmem>>, vector<1x32xf32>,
    %c0_i32_6 = arith.constant 0 : i32
    %9 = arith.cmpi eq, %arg1, %c0_i32_6 : i32
    %10 = arith.extui %9 : i1 to i32
    %c0_i32_7 = arith.constant 0 : i32
    %11 = arith.cmpi ne, %10, %c0_i32_7 : i32
    scf.if %11 {
      %c0_8 = arith.constant 0 : index
      %c0_9 = arith.constant 0 : index
      %12 = vector.load %arg3[%c0_8, %c0_9] : memref<1x32xf32, #tpu.memory_space<vmem>>, vector<1x32xf32>
      %cst_10 = arith.constant 6.250000e-02 : f32
      %13 = vector.broadcast %cst_10 : f32 to vector<1x32xf32>
      %14 = arith.mulf %12, %13 : vector<1x32xf32>
      %c0_11 = arith.constant 0 : index
      %c0_12 = arith.constant 0 : index
      %15 = vector.load %arg3[%c0_11, %c0_12] : memref<1x32xf32, #tpu.memory_space<vmem>>, vector<1x32xf32>
      tpu.vector_store %arg3[%c0_11, %c0_12], %14 {strides = array<i32>} : memref<1x32xf32, #tpu.memory_space<vmem>>, vector<1x32xf32>,
    } else {
    }
    return
  }
  func.func @transform_0(%arg0: i32, %arg1: i32) -> (i32, i32) {
    %c0_i32 = arith.constant 0 : i32
    return %arg1, %arg0 : i32, i32
  }
  func.func @transform_1(%arg0: i32, %arg1: i32) -> (i32, i32) {
    %c0_i32 = arith.constant 0 : i32
    %c0_i32_0 = arith.constant 0 : i32
    return %c0_i32, %arg0 : i32, i32
  }
}

</mosaic_0001>

<bundles_post_ra>
// kernel: tpu_custom_call.1
= control target key start
LH: loop header
LB: loop body
LE: loop exit
PB: predicated region body
PF: predicated region fallthrough
CT: control target
= control target key end

     0   :  { %6 = vsyncpa [#allocation3], 0  ;;  %s161_s0 = inlined_call_operand.hbm [shape: f32[16,32], index: 0, kind: input, shape index: {}]   ;;  %s162_s1 = inlined_call_operand.hbm [shape: f32[1,32], index: 1, kind: output, shape index: {}]  }
   0x1   :  { %7 = vsyncpa [#allocation4], 0  ;;  %s119_s6 = smov [#allocation2]   ;;  %s71_s10 = scalar_lea.hbm %s161_s0, 256 }
   0x2   :  { %s13_s7 = sshll.u32 %s119_s6, 4  ;;  %p72_p0 = scmp.ne.s32.totalorder %s161_s0, %s71_s10  ;;  %s14_s7 = int_to_ptr.vmem [resolvable:$true] %s13_s7 }
   0x3   :  { %p75_p1 = scmp.lt.u32.totalorder %s71_s10, %s161_s0 }
   0x5   :  { %p77_p2 = pnand %p75_p1, %p72_p0 }
   0x7   :  { %80 = shalt.err (!%p77_p2)
}
   0x8   :  { %s81_s15 = scalar_lea.vmem %s14_s7, 256  ;;  %p86_p4 = scmp.lt.s32.totalorder %s14_s7, %s14_s7 }
   0x9   :  { %p82_p3 = scmp.ne.s32.totalorder %s14_s7, %s81_s15  ;;  %p87_p5 = scmp.lt.s32.totalorder %s81_s15, %s81_s15 }
   0xb   :  { %p88_p6 = por %p87_p5, %p86_p4 }
   0xd   :  { %p89_p7 = pnand %p88_p6, %p82_p3 }
   0xf   :  { %92 = shalt.err (!%p89_p7)
}
  0x10   :  { %s120_s16 = smov 128   ;;  %s121_s17 = smov 8  }
  0x11   :  { %19 = dma.hbm_to_vmem [thread:$0]  %s161_s0, 256, %s14_s7, [#allocation3], %s120_s16, %s120_s16, %s121_s17  }
  0x12   :  { %115 = dma.done.wait [#allocation3], 256  }
  0x13   :  { %116 = vsyncadd [#allocation3], 4294967040  ;;  %vm27_vm0 = vcmask 253952   ;;  %v122_v0 = vmov 0.0   ;;  %vm32_vm1 = vcmask 261120   ;;  %v30_v1 = vld [vmem:[#allocation2] sm:$0xff] }
  0x14   :  { %28 = vst.msk [vmem:[#allocation5] sm:$0x1] %vm27_vm0, %v122_v0  ;;  %v31_v2 = vld [vmem:[#allocation2 + $0x8] sm:$0xff]  ;;  %v33_v3 = vsel %vm32_vm1, %v30_v1, 0.0  ;;  %s123_s0 = smov [#allocation5]  }
  0x15   :  { %v34_v4 = vsel %vm32_vm1, %v31_v2, 0.0  ;;  %s57_s20 = sshll.u32 %s123_s0, 4  ;;  %s58_s20 = int_to_ptr.vmem [resolvable:$true] %s57_s20 }
  0x16   :  { %v35_v5 = vadd.f32 %v34_v4, %v33_v3  ;;  %s93_s21 = scalar_lea.vmem %s58_s20, 16  ;;  %s97_s22 = scalar_lea.vmem %s58_s20, 32 }
  0x17   :  { %p94_p8 = scmp.ne.s32.totalorder %s58_s20, %s93_s21  ;;  %p98_p9 = scmp.lt.s32.totalorder %s58_s20, %s58_s20 }
  0x18   :  { %v36_v6 = vrot.slane %v35_v5, 4  ;;  %p99_p10 = scmp.lt.s32.totalorder %s97_s22, %s93_s21 }
  0x1a   :  { %v37_v7 = vadd.f32 %v36_v6, %v35_v5  ;;  %p100_p11 = por %p99_p10, %p98_p9 }
  0x1b   :  { %v29_v11 = vld [vmem:[#allocation5] sm:$0x1] }
  0x1c   :  { %v38_v8 = vrot.slane %v37_v7, 2  ;;  %p101_p12 = pnand %p100_p11, %p94_p8 }
  0x1e   :  { %v39_v9 = vadd.f32 %v38_v8, %v37_v7 }
  0x20   :  { %v40_v10 = vrot.slane %v39_v9, 1 }
  0x22   :  { %v41_v12 = vadd.f32 %v40_v10, %v39_v9 }
  0x24   :  { %v42_v13 = vadd.f32 %v41_v12, %v29_v11 }
  0x26   :  { %44 = vst.msk [vmem:[#allocation5] sm:$0x1] %vm27_vm0, %v42_v13 }
  0x2d   :  { %v48_v14 = vld [vmem:[#allocation5] sm:$0x1] }
  0x2e   :  { %v49_v15 = vmul.f32 0.0625, %v48_v14 }
  0x30   :  { %50 = vst.msk [vmem:[#allocation5] sm:$0x1] %vm27_vm0, %v49_v15 }
  0x31   :  { %104 = shalt.err (!%p101_p12)
}
  0x32   :  { %s105_s25 = scalar_lea.hbm %s162_s1, 16 }
  0x33   :  { %p106_p13 = scmp.ne.s32.totalorder %s162_s1, %s105_s25  ;;  %p109_p0 = scmp.lt.u32.totalorder %s105_s25, %s162_s1 }
  0x35   :  { %p111_p1 = pnand %p109_p0, %p106_p13 }
  0x37   :  { %114 = shalt.err (!%p111_p1)
}
  0x38   :  { %60 = dma.vmem_to_hbm [thread:$0]  %s58_s20, 16, %s162_s1, [#allocation4]  }
  0x39   :  { %117 = dma.done.wait [#allocation4], 16  }
  0x3a   :  { %118 = vsyncadd [#allocation4], 4294967280 }
  0x3b   :  { %64 = vsyncpa [#allocation3], 1 }
  0x3c   :  { %65 = vsyncpa [#allocation4], 1 }

</bundles_post_ra>
